<compile_context>
chip_gen: v6e
topology: v6e:2x2x1
jax: 0.10.0
libtpu: 0.0.40
codegen_flags: <defaults>
</compile_context>

<pallas_src>
import jax
import jax.numpy as jnp
from jax import lax
from jax.experimental import pallas as pl
from jax.experimental.pallas import tpu as pltpu


def bilstm_crf_kernel(x_ref, wx_ref, wh_ref, b_ref, h0_ref, c0_ref,
                      wd_ref, bd_ref, start_ref, end_ref, transT_ref,
                      emis_ref, preds_ref,
                      xp_ref, hf_ref, hb_ref, hist_ref):
    SB, E = x_ref.shape
    B = h0_ref.shape[1]
    H = h0_ref.shape[-1]
    T = bd_ref.shape[-1]
    S = SB // B
    H4 = 4 * H
    f32 = jnp.float32

    x_flat = x_ref[...]                                   # (S*B, E)

    # ---------------- bidirectional LSTM -------------------------------------
    def run_direction(d, hs_ref, reverse):
        # hoisted input projection: one big matmul, gates fused along 4H
        xp_ref[...] = (jnp.dot(x_flat, wx_ref[d], preferred_element_type=f32)
                       + b_ref[d])                        # (S*B, 4H)
        wh_d = wh_ref[d]                                  # (H, 4H), kept in vregs

        def step(s, carry):
            h, c = carry
            t = (S - 1 - s) if reverse else s
            row = pl.multiple_of(t * B, B)
            gates = xp_ref[pl.ds(row, B), :] + jnp.dot(
                h, wh_d, preferred_element_type=f32)      # (B, 4H) lane-dense
            i_g = jax.nn.sigmoid(gates[:, 0:H])
            f_g = jax.nn.sigmoid(gates[:, H:2 * H])
            g_g = jnp.tanh(gates[:, 2 * H:3 * H])
            o_g = jax.nn.sigmoid(gates[:, 3 * H:H4])
            c = f_g * c + i_g * g_g
            h = o_g * jnp.tanh(c)
            hs_ref[pl.ds(row, B), :] = h
            return (h, c)

        lax.fori_loop(0, S, step, (h0_ref[d], c0_ref[d]))

    run_direction(0, hf_ref, reverse=False)
    run_direction(1, hb_ref, reverse=True)

    # ---------------- dense, fused over all timesteps ------------------------
    e_all = (jnp.dot(hf_ref[...], wd_ref[0], preferred_element_type=f32)
             + jnp.dot(hb_ref[...], wd_ref[1], preferred_element_type=f32)
             + bd_ref[...])                               # (S*B, T)
    emis_ref[...] = e_all                                 # single store

    # ---------------- CRF Viterbi decode (mask == all ones) ------------------
    transT = transT_ref[...]                              # (T_dst, T_src)
    lane2 = lax.broadcasted_iota(jnp.int32, (B, T), 1)
    iota3 = lax.broadcasted_iota(jnp.int32, (B, T, T), 2)

    score0 = emis_ref[pl.ds(0, B), :] + start_ref[...]    # (B, T)

    def vit_fwd(t, score):
        row = pl.multiple_of(t * B, B)
        e_t = emis_ref[pl.ds(row, B), :]                  # (B, T)
        cand = score[:, None, :] + transT[None, :, :]     # (B, T_dst, T_src)
        m = jnp.max(cand, axis=-1)                        # (B, T)
        idx = jnp.min(jnp.where(cand == m[..., None], iota3, T), axis=-1)
        hist_ref[t - 1] = idx                             # backpointers (B, T)
        return m + e_t

    score = lax.fori_loop(1, S, vit_fwd, score0)

    final = score + end_ref[...]                          # (B, T)
    m_fin = jnp.max(final, axis=-1, keepdims=True)
    best = jnp.min(jnp.where(final == m_fin, lane2, T),
                   axis=-1, keepdims=True)                # (B, 1) int32

    col = lax.broadcasted_iota(jnp.int32, (B, S), 1)
    preds0 = jnp.where(col == S - 1, best, 0)             # (B, S) int32

    def backtrack(k, carry):
        best, preds = carry
        t = S - 2 - k
        hist_t = hist_ref[t]                              # (B, T)
        best = jnp.sum(jnp.where(lane2 == best, hist_t, 0),
                       axis=-1, keepdims=True)            # one-hot gather
        preds = preds + jnp.where(col == t, best, 0)
        return (best, preds)

    _, preds = lax.fori_loop(0, S - 1, backtrack, (best, preds0))
    preds_ref[...] = preds                                # one (B, S) store


# ---------------------------- host-side glue ---------------------------------
def make_params(key, V, E, H, T, pad_idx):
    keys = jax.random.split(key, 16)

    def u(k, shape, bound):
        return jax.random.uniform(k, shape, jnp.float32, -bound, bound)

    embed = jax.random.normal(keys[0], (V, E), jnp.float32)
    embed = embed.at[pad_idx].set(0.0)
    kb = 1.0 / (H ** 0.5)
    lstm = {}
    for d, base in zip(("fwd", "bwd"), (1, 5)):
        lstm[d] = dict(
            w_ih=u(keys[base + 0], (4 * H, E), kb),
            w_hh=u(keys[base + 1], (4 * H, H), kb),
            b_ih=u(keys[base + 2], (4 * H,), kb),
            b_hh=u(keys[base + 3], (4 * H,), kb),
        )
    kd = 1.0 / ((2 * H) ** 0.5)
    dense_w = u(keys[9], (T, 2 * H), kd)
    dense_b = u(keys[10], (T,), kd)
    crf = dict(start=u(keys[11], (T,), 0.1),
               end=u(keys[12], (T,), 0.1),
               trans=u(keys[13], (T, T), 0.1))
    return embed, lstm, dense_w, dense_b, crf


def bilstm_crf_forward(texts, embed, lstm, dense_w, dense_b, crf, h0, c0):
    B, S = texts.shape
    E = embed.shape[1]
    H = h0.shape[-1]
    T = dense_b.shape[0]

    # embedding lookup + time-major flatten (host-side XLA gather)
    x_flat = jnp.transpose(embed[texts], (1, 0, 2)).reshape(S * B, E)
    x_flat = x_flat.astype(jnp.float32)

    # fuse the 4 gates along the output axis (PyTorch order i|f|g|o)
    def fuse(d):
        w_ih = lstm[d]["w_ih"]                             # (4H, E)
        w_hh = lstm[d]["w_hh"]                             # (4H, H)
        b = lstm[d]["b_ih"] + lstm[d]["b_hh"]              # (4H,)
        return w_ih.T, w_hh.T, b.reshape(1, 4 * H)

    wxf, whf, bf = fuse("fwd")
    wxb, whb, bb = fuse("bwd")
    wx = jnp.stack([wxf, wxb], 0)                          # (2, E, 4H)
    wh = jnp.stack([whf, whb], 0)                          # (2, H, 4H)
    bg = jnp.stack([bf, bb], 0)                            # (2, 1, 4H)

    wd = jnp.stack([dense_w[:, :H].T, dense_w[:, H:].T], 0)  # (2, H, T)
    bd = dense_b.reshape(1, T)
    start = crf["start"].reshape(1, T)
    end = crf["end"].reshape(1, T)
    transT = crf["trans"].T                                # (T_dst, T_src)

    vmem = pl.BlockSpec(memory_space=pltpu.MemorySpace.VMEM)
    emis_flat, preds = pl.pallas_call(
        bilstm_crf_kernel,
        out_shape=(jax.ShapeDtypeStruct((S * B, T), jnp.float32),
                   jax.ShapeDtypeStruct((B, S), jnp.int32)),
        in_specs=[vmem] * 11,
        out_specs=(vmem, vmem),
        scratch_shapes=[
            pltpu.VMEM((S * B, 4 * H), jnp.float32),       # xp (input proj)
            pltpu.VMEM((S * B, H), jnp.float32),           # h_fwd all steps
            pltpu.VMEM((S * B, H), jnp.float32),           # h_bwd all steps
            pltpu.VMEM((S - 1, B, T), jnp.int32),          # Viterbi backptrs
        ],
    )(x_flat, wx, wh, bg, h0, c0, wd, bd, start, end, transT)
    return emis_flat.reshape(S, B, T), preds


def reference_forward(texts, embed, lstm, dense_w, dense_b, crf, h0, c0):
    B, S = texts.shape
    x = jnp.transpose(embed[texts], (1, 0, 2))

    def run(d, order, p):
        h, c = h0[d], c0[d]
        outs = [None] * S
        for t in order:
            g = x[t] @ p["w_ih"].T + p["b_ih"] + h @ p["w_hh"].T + p["b_hh"]
            i, f, gg, o = jnp.split(g, 4, axis=-1)
            i, f, o = jax.nn.sigmoid(i), jax.nn.sigmoid(f), jax.nn.sigmoid(o)
            c = f * c + i * jnp.tanh(gg)
            h = o * jnp.tanh(c)
            outs[t] = h
        return outs

    hf = run(0, range(S), lstm["fwd"])
    hb = run(1, range(S - 1, -1, -1), lstm["bwd"])
    feats = jnp.stack([jnp.concatenate([hf[t], hb[t]], -1) @ dense_w.T + dense_b
                       for t in range(S)], 0)              # (S, B, T)
    score = crf["start"] + feats[0]
    hist = []
    for t in range(1, S):
        ns = score[:, :, None] + crf["trans"][None] + feats[t][:, None, :]
        hist.append(jnp.argmax(ns, axis=1))
        score = jnp.max(ns, axis=1)
    score = score + crf["end"]
    last = jnp.argmax(score, axis=-1).astype(jnp.int32)
    preds = [last]
    for t in range(S - 2, -1, -1):
        last = jnp.take_along_axis(hist[t], last[:, None], axis=1)[:, 0].astype(jnp.int32)
        preds.append(last)
    return feats, jnp.stack(preds[::-1], axis=1)


if __name__ == "__main__":
    V, E, H, T, pad = 50, 16, 32, 5, 0     # vocab, embedding_dim, hidden_size, tags
    B, S = 2, 8                            # batch, seq_len
    key = jax.random.PRNGKey(0)
    k_par, k_txt, k_h, k_c = jax.random.split(key, 4)
    embed, lstm, dense_w, dense_b, crf = make_params(k_par, V, E, H, T, pad)
    texts = jax.random.randint(k_txt, (B, S), 1, V, dtype=jnp.int32)
    # PyTorch draws torch.randn hidden state each forward; here it is a
    # deterministic draw from a fixed key (synthetic, no checkpoint).
    h0 = jax.random.normal(k_h, (2, B, H), jnp.float32)
    c0 = jax.random.normal(k_c, (2, B, H), jnp.float32)

    emissions, preds = bilstm_crf_forward(texts, embed, lstm, dense_w, dense_b,
                                          crf, h0, c0)
    jax.block_until_ready((emissions, preds))

    ref_e, ref_p = reference_forward(texts, embed, lstm, dense_w, dense_b,
                                     crf, h0, c0)
    assert emissions.shape == (S, B, T) and preds.shape == (B, S)
    assert jnp.allclose(emissions, ref_e, atol=1e-3, rtol=1e-3)
    assert jnp.array_equal(preds, ref_p)
    print("KERNEL_OK")
</pallas_src>

<mosaic_0001>
module attributes {stable_mosaic.version = 11 : i64} {
  func.func @bilstm_crf_kernel(%arg0: memref<16x16xf32, #tpu.memory_space<vmem>>, %arg1: memref<2x16x128xf32, #tpu.memory_space<vmem>>, %arg2: memref<2x32x128xf32, #tpu.memory_space<vmem>>, %arg3: memref<2x1x128xf32, #tpu.memory_space<vmem>>, %arg4: memref<2x2x32xf32, #tpu.memory_space<vmem>>, %arg5: memref<2x2x32xf32, #tpu.memory_space<vmem>>, %arg6: memref<2x32x5xf32, #tpu.memory_space<vmem>>, %arg7: memref<1x5xf32, #tpu.memory_space<vmem>>, %arg8: memref<1x5xf32, #tpu.memory_space<vmem>>, %arg9: memref<1x5xf32, #tpu.memory_space<vmem>>, %arg10: memref<5x5xf32, #tpu.memory_space<vmem>>, %arg11: memref<16x5xf32, #tpu.memory_space<vmem>>, %arg12: memref<2x8xi32, #tpu.memory_space<vmem>>, %arg13: memref<16x128xf32, #tpu.memory_space<vmem>>, %arg14: memref<16x32xf32, #tpu.memory_space<vmem>>, %arg15: memref<16x32xf32, #tpu.memory_space<vmem>>, %arg16: memref<7x2x5xi32, #tpu.memory_space<vmem>>) attributes {dimension_semantics = [], scalar_prefetch = 0 : i64, scratch_operands = 4 : i64, tpu.core_type = #tpu.core_type<tc>} {
    %c0 = arith.constant 0 : index
    %c0_0 = arith.constant 0 : index
    %0 = vector.load %arg0[%c0, %c0_0] : memref<16x16xf32, #tpu.memory_space<vmem>>, vector<16x16xf32>
    %c0_1 = arith.constant 0 : index
    %c0_2 = arith.constant 0 : index
    %c0_3 = arith.constant 0 : index
    %1 = vector.load %arg1[%c0_1, %c0_2, %c0_3] : memref<2x16x128xf32, #tpu.memory_space<vmem>>, vector<1x16x128xf32>
    %2 = vector.shape_cast %1 : vector<1x16x128xf32> to vector<16x128xf32>
    %cst = arith.constant dense<0.000000e+00> : vector<16x128xf32>
    %3 = tpu.matmul %0, %2, %cst {dimension_numbers = #tpu.dot_dimension_numbers<[1], [0], [0], [1], [0, 0, 1, 1], [], []>} : vector<16x16xf32>, vector<16x128xf32>, vector<16x128xf32> -> vector<16x128xf32>
    %c0_4 = arith.constant 0 : index
    %c0_5 = arith.constant 0 : index
    %c0_6 = arith.constant 0 : index
    %4 = vector.load %arg3[%c0_4, %c0_5, %c0_6] : memref<2x1x128xf32, #tpu.memory_space<vmem>>, vector<1x1x128xf32>
    %5 = vector.shape_cast %4 : vector<1x1x128xf32> to vector<1x128xf32>
    %6 = vector.broadcast %5 : vector<1x128xf32> to vector<16x128xf32>
    %7 = arith.addf %3, %6 : vector<16x128xf32>
    %c0_7 = arith.constant 0 : index
    %c0_8 = arith.constant 0 : index
    %8 = vector.load %arg13[%c0_7, %c0_8] : memref<16x128xf32, #tpu.memory_space<vmem>>, vector<16x128xf32>
    tpu.vector_store %arg13[%c0_7, %c0_8], %7 {strides = array<i32>} : memref<16x128xf32, #tpu.memory_space<vmem>>, vector<16x128xf32>,
    %c0_9 = arith.constant 0 : index
    %c0_10 = arith.constant 0 : index
    %c0_11 = arith.constant 0 : index
    %9 = vector.load %arg2[%c0_9, %c0_10, %c0_11] : memref<2x32x128xf32, #tpu.memory_space<vmem>>, vector<1x32x128xf32>
    %10 = vector.shape_cast %9 : vector<1x32x128xf32> to vector<32x128xf32>
    %c0_12 = arith.constant 0 : index
    %c0_13 = arith.constant 0 : index
    %c0_14 = arith.constant 0 : index
    %11 = vector.load %arg4[%c0_12, %c0_13, %c0_14] : memref<2x2x32xf32, #tpu.memory_space<vmem>>, vector<1x2x32xf32>
    %12 = vector.shape_cast %11 : vector<1x2x32xf32> to vector<2x32xf32>
    %c0_15 = arith.constant 0 : index
    %c0_16 = arith.constant 0 : index
    %c0_17 = arith.constant 0 : index
    %13 = vector.load %arg5[%c0_15, %c0_16, %c0_17] : memref<2x2x32xf32, #tpu.memory_space<vmem>>, vector<1x2x32xf32>
    %14 = vector.shape_cast %13 : vector<1x2x32xf32> to vector<2x32xf32>
    %c0_i32 = arith.constant 0 : i32
    %c8_i32 = arith.constant 8 : i32
    %15 = arith.addi %c0_i32, %c8_i32 : i32
    %c1_i32 = arith.constant 1 : i32
    %16:2 = scf.for %arg17 = %c0_i32 to %15 step %c1_i32 iter_args(%arg18 = %12, %arg19 = %14) -> (vector<2x32xf32>, vector<2x32xf32>)  : i32 {
      %c2_i32 = arith.constant 2 : i32
      %76 = arith.muli %arg17, %c2_i32 : i32
      %77 = tpu.assume_multiple %76, 2 : i32
      %78 = arith.index_cast %77 : i32 to index
      %c0_77 = arith.constant 0 : index
      %79 = vector.load %arg13[%78, %c0_77] : memref<16x128xf32, #tpu.memory_space<vmem>>, vector<2x128xf32>
      %cst_78 = arith.constant dense<0.000000e+00> : vector<2x128xf32>
      %80 = tpu.matmul %arg18, %10, %cst_78 {dimension_numbers = #tpu.dot_dimension_numbers<[1], [0], [0], [1], [0, 0, 1, 1], [], []>} : vector<2x32xf32>, vector<32x128xf32>, vector<2x128xf32> -> vector<2x128xf32>
      %81 = arith.addf %79, %80 : vector<2x128xf32>
      %82 = vector.extract_strided_slice %81 {offsets = [0, 0], sizes = [2, 32], strides = [1, 1]} : vector<2x128xf32> to vector<2x32xf32>
      %83 = arith.negf %82 : vector<2x32xf32>
      %84 = math.exp %83 : vector<2x32xf32>
      %cst_79 = arith.constant 1.000000e+00 : f32
      %85 = vector.broadcast %cst_79 : f32 to vector<2x32xf32>
      %86 = arith.addf %85, %84 : vector<2x32xf32>
      %87 = arith.divf %85, %86 : vector<2x32xf32>
      %88 = vector.extract_strided_slice %81 {offsets = [0, 32], sizes = [2, 32], strides = [1, 1]} : vector<2x128xf32> to vector<2x32xf32>
      %89 = arith.negf %88 : vector<2x32xf32>
      %90 = math.exp %89 : vector<2x32xf32>
      %cst_80 = arith.constant 1.000000e+00 : f32
      %91 = vector.broadcast %cst_80 : f32 to vector<2x32xf32>
      %92 = arith.addf %91, %90 : vector<2x32xf32>
      %93 = arith.divf %91, %92 : vector<2x32xf32>
      %94 = vector.extract_strided_slice %81 {offsets = [0, 64], sizes = [2, 32], strides = [1, 1]} : vector<2x128xf32> to vector<2x32xf32>
      %95 = math.tanh %94 : vector<2x32xf32>
      %96 = vector.extract_strided_slice %81 {offsets = [0, 96], sizes = [2, 32], strides = [1, 1]} : vector<2x128xf32> to vector<2x32xf32>
      %97 = arith.negf %96 : vector<2x32xf32>
      %98 = math.exp %97 : vector<2x32xf32>
      %cst_81 = arith.constant 1.000000e+00 : f32
      %99 = vector.broadcast %cst_81 : f32 to vector<2x32xf32>
      %100 = arith.addf %99, %98 : vector<2x32xf32>
      %101 = arith.divf %99, %100 : vector<2x32xf32>
      %102 = arith.mulf %93, %arg19 : vector<2x32xf32>
      %103 = arith.mulf %87, %95 : vector<2x32xf32>
      %104 = arith.addf %102, %103 : vector<2x32xf32>
      %105 = math.tanh %104 : vector<2x32xf32>
      %106 = arith.mulf %101, %105 : vector<2x32xf32>
      %107 = arith.index_cast %77 : i32 to index
      %c0_82 = arith.constant 0 : index
      %108 = vector.load %arg14[%107, %c0_82] : memref<16x32xf32, #tpu.memory_space<vmem>>, vector<2x32xf32>
      tpu.vector_store %arg14[%107, %c0_82], %106 {strides = array<i32>} : memref<16x32xf32, #tpu.memory_space<vmem>>, vector<2x32xf32>,
      scf.yield %106, %104 : vector<2x32xf32>, vector<2x32xf32>
    }
    %c8_i32_18 = arith.constant 8 : i32
    %c1 = arith.constant 1 : index
    %c0_19 = arith.constant 0 : index
    %c0_20 = arith.constant 0 : index
    %17 = vector.load %arg1[%c1, %c0_19, %c0_20] : memref<2x16x128xf32, #tpu.memory_space<vmem>>, vector<1x16x128xf32>
    %18 = vector.shape_cast %17 : vector<1x16x128xf32> to vector<16x128xf32>
    %cst_21 = arith.constant dense<0.000000e+00> : vector<16x128xf32>
    %19 = tpu.matmul %0, %18, %cst_21 {dimension_numbers = #tpu.dot_dimension_numbers<[1], [0], [0], [1], [0, 0, 1, 1], [], []>} : vector<16x16xf32>, vector<16x128xf32>, vector<16x128xf32> -> vector<16x128xf32>
    %c1_22 = arith.constant 1 : index
    %c0_23 = arith.constant 0 : index
    %c0_24 = arith.constant 0 : index
    %20 = vector.load %arg3[%c1_22, %c0_23, %c0_24] : memref<2x1x128xf32, #tpu.memory_space<vmem>>, vector<1x1x128xf32>
    %21 = vector.shape_cast %20 : vector<1x1x128xf32> to vector<1x128xf32>
    %22 = vector.broadcast %21 : vector<1x128xf32> to vector<16x128xf32>
    %23 = arith.addf %19, %22 : vector<16x128xf32>
    %c0_25 = arith.constant 0 : index
    %c0_26 = arith.constant 0 : index
    %24 = vector.load %arg13[%c0_25, %c0_26] : memref<16x128xf32, #tpu.memory_space<vmem>>, vector<16x128xf32>
    tpu.vector_store %arg13[%c0_25, %c0_26], %23 {strides = array<i32>} : memref<16x128xf32, #tpu.memory_space<vmem>>, vector<16x128xf32>,
    %c1_27 = arith.constant 1 : index
    %c0_28 = arith.constant 0 : index
    %c0_29 = arith.constant 0 : index
    %25 = vector.load %arg2[%c1_27, %c0_28, %c0_29] : memref<2x32x128xf32, #tpu.memory_space<vmem>>, vector<1x32x128xf32>
    %26 = vector.shape_cast %25 : vector<1x32x128xf32> to vector<32x128xf32>
    %c1_30 = arith.constant 1 : index
    %c0_31 = arith.constant 0 : index
    %c0_32 = arith.constant 0 : index
    %27 = vector.load %arg4[%c1_30, %c0_31, %c0_32] : memref<2x2x32xf32, #tpu.memory_space<vmem>>, vector<1x2x32xf32>
    %28 = vector.shape_cast %27 : vector<1x2x32xf32> to vector<2x32xf32>
    %c1_33 = arith.constant 1 : index
    %c0_34 = arith.constant 0 : index
    %c0_35 = arith.constant 0 : index
    %29 = vector.load %arg5[%c1_33, %c0_34, %c0_35] : memref<2x2x32xf32, #tpu.memory_space<vmem>>, vector<1x2x32xf32>
    %30 = vector.shape_cast %29 : vector<1x2x32xf32> to vector<2x32xf32>
    %c0_i32_36 = arith.constant 0 : i32
    %c8_i32_37 = arith.constant 8 : i32
    %31 = arith.addi %c0_i32_36, %c8_i32_37 : i32
    %c1_i32_38 = arith.constant 1 : i32
    %32:2 = scf.for %arg17 = %c0_i32_36 to %31 step %c1_i32_38 iter_args(%arg18 = %28, %arg19 = %30) -> (vector<2x32xf32>, vector<2x32xf32>)  : i32 {
      %c7_i32_77 = arith.constant 7 : i32
      %76 = arith.subi %c7_i32_77, %arg17 : i32
      %c2_i32 = arith.constant 2 : i32
      %77 = arith.muli %76, %c2_i32 : i32
      %78 = tpu.assume_multiple %77, 2 : i32
      %79 = arith.index_cast %78 : i32 to index
      %c0_78 = arith.constant 0 : index
      %80 = vector.load %arg13[%79, %c0_78] : memref<16x128xf32, #tpu.memory_space<vmem>>, vector<2x128xf32>
      %cst_79 = arith.constant dense<0.000000e+00> : vector<2x128xf32>
      %81 = tpu.matmul %arg18, %26, %cst_79 {dimension_numbers = #tpu.dot_dimension_numbers<[1], [0], [0], [1], [0, 0, 1, 1], [], []>} : vector<2x32xf32>, vector<32x128xf32>, vector<2x128xf32> -> vector<2x128xf32>
      %82 = arith.addf %80, %81 : vector<2x128xf32>
      %83 = vector.extract_strided_slice %82 {offsets = [0, 0], sizes = [2, 32], strides = [1, 1]} : vector<2x128xf32> to vector<2x32xf32>
      %84 = arith.negf %83 : vector<2x32xf32>
      %85 = math.exp %84 : vector<2x32xf32>
      %cst_80 = arith.constant 1.000000e+00 : f32
      %86 = vector.broadcast %cst_80 : f32 to vector<2x32xf32>
      %87 = arith.addf %86, %85 : vector<2x32xf32>
      %88 = arith.divf %86, %87 : vector<2x32xf32>
      %89 = vector.extract_strided_slice %82 {offsets = [0, 32], sizes = [2, 32], strides = [1, 1]} : vector<2x128xf32> to vector<2x32xf32>
      %90 = arith.negf %89 : vector<2x32xf32>
      %91 = math.exp %90 : vector<2x32xf32>
      %cst_81 = arith.constant 1.000000e+00 : f32
      %92 = vector.broadcast %cst_81 : f32 to vector<2x32xf32>
      %93 = arith.addf %92, %91 : vector<2x32xf32>
      %94 = arith.divf %92, %93 : vector<2x32xf32>
      %95 = vector.extract_strided_slice %82 {offsets = [0, 64], sizes = [2, 32], strides = [1, 1]} : vector<2x128xf32> to vector<2x32xf32>
      %96 = math.tanh %95 : vector<2x32xf32>
      %97 = vector.extract_strided_slice %82 {offsets = [0, 96], sizes = [2, 32], strides = [1, 1]} : vector<2x128xf32> to vector<2x32xf32>
      %98 = arith.negf %97 : vector<2x32xf32>
      %99 = math.exp %98 : vector<2x32xf32>
      %cst_82 = arith.constant 1.000000e+00 : f32
      %100 = vector.broadcast %cst_82 : f32 to vector<2x32xf32>
      %101 = arith.addf %100, %99 : vector<2x32xf32>
      %102 = arith.divf %100, %101 : vector<2x32xf32>
      %103 = arith.mulf %94, %arg19 : vector<2x32xf32>
      %104 = arith.mulf %88, %96 : vector<2x32xf32>
      %105 = arith.addf %103, %104 : vector<2x32xf32>
      %106 = math.tanh %105 : vector<2x32xf32>
      %107 = arith.mulf %102, %106 : vector<2x32xf32>
      %108 = arith.index_cast %78 : i32 to index
      %c0_83 = arith.constant 0 : index
      %109 = vector.load %arg15[%108, %c0_83] : memref<16x32xf32, #tpu.memory_space<vmem>>, vector<2x32xf32>
      tpu.vector_store %arg15[%108, %c0_83], %107 {strides = array<i32>} : memref<16x32xf32, #tpu.memory_space<vmem>>, vector<2x32xf32>,
      scf.yield %107, %105 : vector<2x32xf32>, vector<2x32xf32>
    }
    %c8_i32_39 = arith.constant 8 : i32
    %c0_40 = arith.constant 0 : index
    %c0_41 = arith.constant 0 : index
    %33 = vector.load %arg14[%c0_40, %c0_41] : memref<16x32xf32, #tpu.memory_space<vmem>>, vector<16x32xf32>
    %c0_42 = arith.constant 0 : index
    %c0_43 = arith.constant 0 : index
    %c0_44 = arith.constant 0 : index
    %34 = vector.load %arg6[%c0_42, %c0_43, %c0_44] : memref<2x32x5xf32, #tpu.memory_space<vmem>>, vector<1x32x5xf32>
    %35 = vector.shape_cast %34 : vector<1x32x5xf32> to vector<32x5xf32>
    %cst_45 = arith.constant dense<0.000000e+00> : vector<16x5xf32>
    %36 = tpu.matmul %33, %35, %cst_45 {dimension_numbers = #tpu.dot_dimension_numbers<[1], [0], [0], [1], [0, 0, 1, 1], [], []>} : vector<16x32xf32>, vector<32x5xf32>, vector<16x5xf32> -> vector<16x5xf32>
    %c0_46 = arith.constant 0 : index
    %c0_47 = arith.constant 0 : index
    %37 = vector.load %arg15[%c0_46, %c0_47] : memref<16x32xf32, #tpu.memory_space<vmem>>, vector<16x32xf32>
    %c1_48 = arith.constant 1 : index
    %c0_49 = arith.constant 0 : index
    %c0_50 = arith.constant 0 : index
    %38 = vector.load %arg6[%c1_48, %c0_49, %c0_50] : memref<2x32x5xf32, #tpu.memory_space<vmem>>, vector<1x32x5xf32>
    %39 = vector.shape_cast %38 : vector<1x32x5xf32> to vector<32x5xf32>
    %cst_51 = arith.constant dense<0.000000e+00> : vector<16x5xf32>
    %40 = tpu.matmul %37, %39, %cst_51 {dimension_numbers = #tpu.dot_dimension_numbers<[1], [0], [0], [1], [0, 0, 1, 1], [], []>} : vector<16x32xf32>, vector<32x5xf32>, vector<16x5xf32> -> vector<16x5xf32>
    %41 = arith.addf %36, %40 : vector<16x5xf32>
    %c0_52 = arith.constant 0 : index
    %c0_53 = arith.constant 0 : index
    %42 = vector.load %arg7[%c0_52, %c0_53] : memref<1x5xf32, #tpu.memory_space<vmem>>, vector<1x5xf32>
    %43 = vector.broadcast %42 : vector<1x5xf32> to vector<16x5xf32>
    %44 = arith.addf %41, %43 : vector<16x5xf32>
    %c0_54 = arith.constant 0 : index
    %c0_55 = arith.constant 0 : index
    %45 = vector.load %arg11[%c0_54, %c0_55] : memref<16x5xf32, #tpu.memory_space<vmem>>, vector<16x5xf32>
    tpu.vector_store %arg11[%c0_54, %c0_55], %44 {strides = array<i32>} : memref<16x5xf32, #tpu.memory_space<vmem>>, vector<16x5xf32>,
    %c0_56 = arith.constant 0 : index
    %c0_57 = arith.constant 0 : index
    %46 = vector.load %arg10[%c0_56, %c0_57] : memref<5x5xf32, #tpu.memory_space<vmem>>, vector<5x5xf32>
    %47 = tpu.iota {dimensions = array<i32: 1>} : vector<2x5xi32>
    %48 = tpu.iota {dimensions = array<i32: 2>} : vector<2x5x5xi32>
    %c0_58 = arith.constant 0 : index
    %c0_59 = arith.constant 0 : index
    %49 = vector.load %arg11[%c0_58, %c0_59] : memref<16x5xf32, #tpu.memory_space<vmem>>, vector<2x5xf32>
    %c0_60 = arith.constant 0 : index
    %c0_61 = arith.constant 0 : index
    %50 = vector.load %arg8[%c0_60, %c0_61] : memref<1x5xf32, #tpu.memory_space<vmem>>, vector<1x5xf32>
    %51 = vector.broadcast %50 : vector<1x5xf32> to vector<2x5xf32>
    %52 = arith.addf %49, %51 : vector<2x5xf32>
    %c1_i32_62 = arith.constant 1 : i32
    %c7_i32 = arith.constant 7 : i32
    %53 = arith.addi %c1_i32_62, %c7_i32 : i32
    %c1_i32_63 = arith.constant 1 : i32
    %54 = scf.for %arg17 = %c1_i32_62 to %53 step %c1_i32_63 iter_args(%arg18 = %52) -> (vector<2x5xf32>)  : i32 {
      %c2_i32 = arith.constant 2 : i32
      %76 = arith.muli %arg17, %c2_i32 : i32
      %77 = tpu.assume_multiple %76, 2 : i32
      %78 = arith.index_cast %77 : i32 to index
      %c0_77 = arith.constant 0 : index
      %79 = vector.load %arg11[%78, %c0_77] : memref<16x5xf32, #tpu.memory_space<vmem>>, vector<2x5xf32>
      %80 = vector.shape_cast %arg18 : vector<2x5xf32> to vector<2x1x5xf32>
      %81 = vector.shape_cast %46 : vector<5x5xf32> to vector<1x5x5xf32>
      %82 = vector.broadcast %80 : vector<2x1x5xf32> to vector<2x5x5xf32>
      %83 = vector.broadcast %81 : vector<1x5x5xf32> to vector<2x5x5xf32>
      %84 = arith.addf %82, %83 : vector<2x5x5xf32>
      %cst_78 = arith.constant dense<0xFF800000> : vector<2x5xf32>
      %85 = vector.multi_reduction <maximumf>, %84, %cst_78 [2] : vector<2x5x5xf32> to vector<2x5xf32>
      %86 = vector.shape_cast %85 : vector<2x5xf32> to vector<2x5x1xf32>
      %87 = vector.broadcast %86 : vector<2x5x1xf32> to vector<2x5x5xf32>
      %88 = arith.cmpf oeq, %84, %87 : vector<2x5x5xf32>
      %c5_i32_79 = arith.constant 5 : i32
      %89 = vector.broadcast %c5_i32_79 : i32 to vector<2x5x5xi32>
      %90 = arith.select %88, %48, %89 : vector<2x5x5xi1>, vector<2x5x5xi32>
      %cst_80 = arith.constant dense<2147483647> : vector<2x5xi32>
      %91 = vector.multi_reduction <minsi>, %90, %cst_80 [2] : vector<2x5x5xi32> to vector<2x5xi32>
      %c1_i32_81 = arith.constant 1 : i32
      %92 = arith.subi %arg17, %c1_i32_81 : i32
      %93 = arith.index_cast %92 : i32 to index
      %c0_82 = arith.constant 0 : index
      %c0_83 = arith.constant 0 : index
      %94 = vector.load %arg16[%93, %c0_82, %c0_83] : memref<7x2x5xi32, #tpu.memory_space<vmem>>, vector<1x2x5xi32>
      %95 = vector.shape_cast %94 : vector<1x2x5xi32> to vector<2x5xi32>
      %96 = vector.shape_cast %91 : vector<2x5xi32> to vector<1x2x5xi32>
      tpu.vector_store %arg16[%93, %c0_82, %c0_83], %96 {strides = array<i32>} : memref<7x2x5xi32, #tpu.memory_space<vmem>>, vector<1x2x5xi32>,
      %97 = arith.addf %85, %79 : vector<2x5xf32>
      scf.yield %97 : vector<2x5xf32>
    }
    %c7_i32_64 = arith.constant 7 : i32
    %c0_65 = arith.constant 0 : index
    %c0_66 = arith.constant 0 : index
    %55 = vector.load %arg9[%c0_65, %c0_66] : memref<1x5xf32, #tpu.memory_space<vmem>>, vector<1x5xf32>
    %56 = vector.broadcast %55 : vector<1x5xf32> to vector<2x5xf32>
    %57 = arith.addf %54, %56 : vector<2x5xf32>
    %cst_67 = arith.constant dense<0xFF800000> : vector<2xf32>
    %58 = vector.multi_reduction <maximumf>, %57, %cst_67 [1] : vector<2x5xf32> to vector<2xf32>
    %59 = vector.shape_cast %58 : vector<2xf32> to vector<2x1xf32>
    %60 = vector.broadcast %59 : vector<2x1xf32> to vector<2x5xf32>
    %61 = arith.cmpf oeq, %57, %60 : vector<2x5xf32>
    %c5_i32 = arith.constant 5 : i32
    %62 = vector.broadcast %c5_i32 : i32 to vector<2x5xi32>
    %63 = arith.select %61, %47, %62 : vector<2x5xi1>, vector<2x5xi32>
    %cst_68 = arith.constant dense<2147483647> : vector<2xi32>
    %64 = vector.multi_reduction <minsi>, %63, %cst_68 [1] : vector<2x5xi32> to vector<2xi32>
    %65 = vector.shape_cast %64 : vector<2xi32> to vector<2x1xi32>
    %66 = tpu.iota {dimensions = array<i32: 1>} : vector<2x8xi32>
    %c7_i32_69 = arith.constant 7 : i32
    %67 = vector.broadcast %c7_i32_69 : i32 to vector<2x8xi32>
    %68 = arith.cmpi eq, %66, %67 : vector<2x8xi32>
    %c0_i32_70 = arith.constant 0 : i32
    %69 = vector.shape_cast %65 : vector<2x1xi32> to vector<2x1xi32>
    %70 = vector.broadcast %69 : vector<2x1xi32> to vector<2x8xi32>
    %71 = vector.broadcast %c0_i32_70 : i32 to vector<2x8xi32>
    %72 = arith.select %68, %70, %71 : vector<2x8xi1>, vector<2x8xi32>
    %c0_i32_71 = arith.constant 0 : i32
    %c7_i32_72 = arith.constant 7 : i32
    %73 = arith.addi %c0_i32_71, %c7_i32_72 : i32
    %c1_i32_73 = arith.constant 1 : i32
    %74:2 = scf.for %arg17 = %c0_i32_71 to %73 step %c1_i32_73 iter_args(%arg18 = %65, %arg19 = %72) -> (vector<2x1xi32>, vector<2x8xi32>)  : i32 {
      %c6_i32 = arith.constant 6 : i32
      %76 = arith.subi %c6_i32, %arg17 : i32
      %77 = arith.index_cast %76 : i32 to index
      %c0_77 = arith.constant 0 : index
      %c0_78 = arith.constant 0 : index
      %78 = vector.load %arg16[%77, %c0_77, %c0_78] : memref<7x2x5xi32, #tpu.memory_space<vmem>>, vector<1x2x5xi32>
      %79 = vector.shape_cast %78 : vector<1x2x5xi32> to vector<2x5xi32>
      %80 = vector.broadcast %arg18 : vector<2x1xi32> to vector<2x5xi32>
      %81 = arith.cmpi eq, %47, %80 : vector<2x5xi32>
      %c0_i32_79 = arith.constant 0 : i32
      %82 = vector.broadcast %c0_i32_79 : i32 to vector<2x5xi32>
      %83 = arith.select %81, %79, %82 : vector<2x5xi1>, vector<2x5xi32>
      %cst_80 = arith.constant dense<0> : vector<2xi32>
      %84 = vector.multi_reduction <add>, %83, %cst_80 [1] : vector<2x5xi32> to vector<2xi32>
      %85 = vector.shape_cast %84 : vector<2xi32> to vector<2x1xi32>
      %86 = vector.broadcast %76 : i32 to vector<2x8xi32>
      %87 = arith.cmpi eq, %66, %86 : vector<2x8xi32>
      %c0_i32_81 = arith.constant 0 : i32
      %88 = vector.shape_cast %85 : vector<2x1xi32> to vector<2x1xi32>
      %89 = vector.broadcast %88 : vector<2x1xi32> to vector<2x8xi32>
      %90 = vector.broadcast %c0_i32_81 : i32 to vector<2x8xi32>
      %91 = arith.select %87, %89, %90 : vector<2x8xi1>, vector<2x8xi32>
      %92 = arith.addi %arg19, %91 : vector<2x8xi32>
      scf.yield %85, %92 : vector<2x1xi32>, vector<2x8xi32>
    }
    %c7_i32_74 = arith.constant 7 : i32
    %c0_75 = arith.constant 0 : index
    %c0_76 = arith.constant 0 : index
    %75 = vector.load %arg12[%c0_75, %c0_76] : memref<2x8xi32, #tpu.memory_space<vmem>>, vector<2x8xi32>
    tpu.vector_store %arg12[%c0_75, %c0_76], %74#1 {strides = array<i32>} : memref<2x8xi32, #tpu.memory_space<vmem>>, vector<2x8xi32>,
    return
  }
}

</mosaic_0001>

<bundles_post_ra>
// kernel: tpu_custom_call.1
= control target key start
LH: loop header
LB: loop body
LE: loop exit
PB: predicated region body
PF: predicated region fallthrough
CT: control target
= control target key end

     0   :  { %18 = vsyncpa [#allocation7], 0  ;;  %s1779_s0 = inlined_call_operand.hbm [shape: f32[16,16], index: 0, kind: input, shape index: {}]   ;;  %s1780_s1 = inlined_call_operand.hbm [shape: f32[2,16,128], index: 1, kind: input, shape index: {}]   ;;  %s1781_s2 = inlined_call_operand.vmem [shape: f32[2,32,128], index: 2, kind: input, shape index: {}]   ;;  %s1782_s3 = inlined_call_operand.vmem [shape: f32[2,1,128], index: 3, kind: input, shape index: {}]   ;;  %s1783_s4 = inlined_call_operand.hbm [shape: f32[2,2,32], index: 4, kind: input, shape index: {}]   ;;  %s1784_s5 = inlined_call_operand.hbm [shape: f32[2,2,32], index: 5, kind: input, shape index: {}]   ;;  %s1785_s6 = inlined_call_operand.vmem [shape: f32[2,32,5], index: 6, kind: input, shape index: {}]   ;;  %s1786_s7 = inlined_call_operand.vmem [shape: f32[1,5], index: 7, kind: input, shape index: {}]   ;;  %s1787_s8 = inlined_call_operand.vmem [shape: f32[1,5], index: 8, kind: input, shape index: {}]   ;;  %s1788_s9 = inlined_call_operand.vmem [shape: f32[1,5], index: 9, kind: input, shape index: {}]   ;;  %s1789_s10 = inlined_call_operand.vmem [shape: f32[5,5], index: 10, kind: input, shape index: {}]   ;;  %s1790_s11 = inlined_call_operand.vmem [shape: f32[16,5], index: 11, kind: output, shape index: {0}]   ;;  %s1791_s12 = inlined_call_operand.hbm [shape: s32[2,8], index: 12, kind: output, shape index: {1}]  }
   0x1   :  { %19 = vsyncpa [#allocation10], 0 }
   0x2   :  { %20 = vsyncpa [#allocation13], 0 }
   0x3   :  { %21 = vsyncpa [#allocation8], 0  ;;  %s1466_s21 = smov [#allocation9]   ;;  %s1467_s23 = smov [#allocation6]  }
   0x4   :  { %s39_s22 = sshll.u32 %s1466_s21, 4  ;;  %s27_s24 = sshll.u32 %s1467_s23, 4  ;;  %s40_s22 = int_to_ptr.vmem [resolvable:$true] %s39_s22  ;;  %s28_s24 = int_to_ptr.vmem [resolvable:$true] %s27_s24 }
   0x5   :  { %s1278_s25 = scalar_lea.vmem %s40_s22, 512  ;;  %p1283_p1 = scmp.lt.s32.totalorder %s40_s22, %s40_s22 }
   0x6   :  { %p1279_p0 = scmp.ne.s32.totalorder %s40_s22, %s1278_s25  ;;  %p1284_p2 = scmp.lt.s32.totalorder %s1278_s25, %s1278_s25 }
   0x8   :  { %p1285_p3 = por %p1284_p2, %p1283_p1 }
   0xa   :  { %p1286_p4 = pnand %p1285_p3, %p1279_p0 }
   0xc   :  { %1289 = shalt.err (!%p1286_p4)
}
   0xd   :  { %s1468_s26 = smov 128   ;;  %s1469_s27 = smov 8  }
   0xe   :  { %45 = dma.hbm_to_vmem [thread:$0]  %s1780_s1, 512, %s40_s22, [#allocation10], %s1468_s26, %s1468_s26, %s1469_s27  }
   0xf   :  { %s1298_s30 = scalar_lea.vmem %s28_s24, 256  ;;  %p1303_p6 = scmp.lt.s32.totalorder %s28_s24, %s28_s24 }
  0x10   :  { %p1299_p5 = scmp.ne.s32.totalorder %s28_s24, %s1298_s30  ;;  %p1304_p7 = scmp.lt.s32.totalorder %s1298_s30, %s1298_s30 }
  0x12   :  { %p1305_p8 = por %p1304_p7, %p1303_p6 }
  0x14   :  { %p1306_p9 = pnand %p1305_p8, %p1299_p5 }
  0x16   :  { %1309 = shalt.err (!%p1306_p9)
}
  0x17   :  { %33 = dma.hbm_to_vmem [thread:$0]  %s1779_s0, 256, %s28_s24, [#allocation7], %s1468_s26, %s1468_s26, %s1469_s27  }
  0x18   :  { %s1470_s15 = smov [#allocation11]  }
  0x19   :  { %s55_s16 = sshll.u32 %s1470_s15, 4  ;;  %s56_s16 = int_to_ptr.vmem [resolvable:$true] %s55_s16 }
  0x1a   :  { %s1318_s17 = scalar_lea.vmem %s56_s16, 64  ;;  %p1323_p11 = scmp.lt.s32.totalorder %s56_s16, %s56_s16 }
  0x1b   :  { %p1319_p10 = scmp.ne.s32.totalorder %s56_s16, %s1318_s17  ;;  %p1324_p12 = scmp.lt.s32.totalorder %s1318_s17, %s1318_s17 }
  0x1d   :  { %p1325_p13 = por %p1324_p12, %p1323_p11 }
  0x1f   :  { %p1326_p0 = pnand %p1325_p13, %p1319_p10 }
  0x21   :  { %1329 = shalt.err (!%p1326_p0)
}
  0x22   :  { %s1471_s1 = smov 32   ;;  %s1472_s18 = smov 2  }
  0x23   :  { %61 = dma.hbm_to_vmem [thread:$0]  %s1783_s4, 64, %s56_s16, [#allocation10], %s1471_s1, %s1471_s1, %s1472_s18  }
  0x24   :  { %s1473_s21 = smov [#allocation12]  }
  0x25   :  { %s67_s22 = sshll.u32 %s1473_s21, 4  ;;  %s68_s22 = int_to_ptr.vmem [resolvable:$true] %s67_s22 }
  0x26   :  { %s1338_s0 = scalar_lea.vmem %s68_s22, 64  ;;  %p1343_p2 = scmp.lt.s32.totalorder %s68_s22, %s68_s22 }
  0x27   :  { %p1339_p1 = scmp.ne.s32.totalorder %s68_s22, %s1338_s0  ;;  %p1344_p3 = scmp.lt.s32.totalorder %s1338_s0, %s1338_s0 }
  0x29   :  { %p1345_p4 = por %p1344_p3, %p1343_p2 }
  0x2b   :  { %p1346_p5 = pnand %p1345_p4, %p1339_p1 }
  0x2d   :  { %1349 = shalt.err (!%p1346_p5)
}
  0x2e   :  { %73 = dma.hbm_to_vmem [thread:$0]  %s1784_s5, 64, %s68_s22, [#allocation13], %s1471_s1, %s1471_s1, %s1472_s18  }
  0x2f   :  { %1414 = dma.done.wait [#allocation7], 256  }
  0x30   :  { %1415 = vsyncadd [#allocation7], 4294967040 }
  0x31   :  { %1416 = dma.done.wait [#allocation10], 576  }
  0x32   :  { %1417 = vsyncadd [#allocation10], 4294966720 }
  0x33   :  { %1418 = dma.done.wait [#allocation13], 64  }
  0x34   :  { %1419 = vsyncadd [#allocation13], 4294967232  ;;  %v1567_v0 = vld [vmem:[%s1781_s2] sm:$0xff]  ;;  %v1572_v1 = vld [vmem:[%s1781_s2 + $0x8] sm:$0xff]  ;;  %vm107_vm0 = vcmask 130048   ;;  %s1599_s15 = smov 0  }
  0x35   :  { %v1577_v2 = vld [vmem:[%s1781_s2 + $0x10] sm:$0xff]  ;;  %v1582_v3 = vld [vmem:[%s1781_s2 + $0x18] sm:$0xff]  ;;  %v195_v4 = vld [vmem:[#allocation11] sm:$0x3]  }
  0x36   :  { %v196_v5 = vld [vmem:[#allocation12] sm:$0x3]   ;;  %v99_v6 = vld [vmem:[#allocation9 + $0x8] sm:$0xff]  ;;  %v1584_v8 = vld [vmem:[#allocation6] sm:$0xff] }
  0x37   :  { %v98_v7 = vld [vmem:[#allocation9] sm:$0xff]  ;;  %1085 = vmatprep.subr.mxu0 %v99_v6  ;;  %1089 = vmatprep.mubr.msk.f32.mxu0 %vm107_vm0, %v1584_v8  ;;  %v1588_v9 = vld [vmem:[#allocation6 + $0x8] sm:$0xff]  ;;  %v1023_v10 = vld [vmem:[%s1782_s3] ss:$0 sm:$0xff] }
  0x38   :  { %1086 = vmatpush3.msra.mxu0 %v99_v6 }
  0x39   :  { %1087 = vmatprep.subr.mxu0 %v98_v7 }
  0x3a   :  { %1088 = vmatpush3.msra.mxu0 %v98_v7 }
  0x3b   :  { %1090 = vmatmul.mubr.msk.f32.vlgmr.msra.gmra.mxu0 %vm107_vm0, %v1588_v9 }
  0xfb   :  { %v1091_v11 = vpop.f32.mrf.mxu0 }
  0xfc   :  { %v186_v12 = vadd.f32 %v1091_v11, %v1023_v10 }
  0xfd   :  { %v180_v13 = vpop.f32.mrf.mxu0 }
  0xfe   :  { %190 = vst [vmem:[#allocation2 + $0x8] sm:$0xff] %v186_v12  ;;  %v181_v14 = vadd.f32 %v1023_v10, %v180_v13 }
 0x100   :  { %189 = vst [vmem:[#allocation2] sm:$0xff] %v181_v14 }
 0x101 LB: > { %v1474_v15 = vmov 0.0   ;;  %vm1475_vm1 = vmmov 0   ;;  %vm208_vm2 = vcmask 261120   ;;  %s1026_s16 = sshll.u32 %s1432_s15, 1  ;;  %s1476_s1 = smov 64   ;;  %vm316_vm3 = vcmask 254976   ;;  %s1432_s15 = sphi %s1599_s15, %s202_s15   ;;  %v1428_v4 = vphi %v195_v4, %v313_v4   ;;  %v1424_v5 = vphi %v196_v5, %v320_v5  }
 0x102   : > { %1092 = vmatprep.subr.mxu0 %v1474_v15  ;;  %1100 = vmatprep.mubr.msk.f32.mxu0 %vm1475_vm1, %v1474_v15  ;;  %s206_s17 = scalar_lea.vmem [#allocation2], %s1026_s16  ;;  %s1477_s18 = smov 32  }
 0x103   : > { %1093 = vmatpush3.msra.mxu0 %v1582_v3  ;;  %s1478_s19 = smov 96   ;;  %s315_s20 = scalar_lea.vmem [#allocation3], %s1026_s16 }
 0x104   : > { %1094 = vmatprep.subr.mxu0 %v1474_v15  ;;  %s202_s15 = sadd.s32 1, %s1432_s15  }
 0x105   : > { %1095 = vmatpush3.msra.mxu0 %v1577_v2  ;;  %p199_p6 = scmp.ge.s32.totalorder %s202_s15, 8  }
 0x106   : > { %1096 = vmatprep.subr.mxu0 %v1474_v15  ;;  %v324_v34 = vld [vmem:[#allocation9 + $0x18] sm:$0xff] (%p199_p6)  ;;  %v323_v35 = vld [vmem:[#allocation9 + $0x10] sm:$0xff] (%p199_p6)  ;;  %v1641_v38 = vld [vmem:[%s1781_s2 + $0x30] sm:$0xff] (%p199_p6)  ;;  %s1653_s29 = smov (%p199_p6), 0  }
 0x107   : > { %1097 = vmatpush3.msra.mxu0 %v1572_v1  ;;  %v207_v16 = vld [vmem:[%s206_s17] sm:$0x3]  ;;  %v1636_v37 = vld [vmem:[%s1781_s2 + $0x28] sm:$0xff] (%p199_p6)  ;;  %v1646_v39 = vld [vmem:[%s1781_s2 + $0x38] sm:$0xff] (%p199_p6) }
 0x108   : > { %1098 = vmatprep.subr.mxu0 %v1474_v15  ;;  %v1631_v36 = vld [vmem:[%s1781_s2 + $0x20] sm:$0xff] (%p199_p6)  ;;  %v416_v40 = vld [vmem:[#allocation11 + $0x2] sm:$0x3] (%p199_p6)   ;;  %v418_v41 = vld [vmem:[#allocation12 + $0x2] sm:$0x3] (%p199_p6)  }
 0x109   : > { %1099 = vmatpush3.msra.mxu0 %v1567_v0  ;;  %v1030_v42 = vld [vmem:[%s1782_s3 + $0x1] ss:$0 sm:$0xff] (%p199_p6)  ;;  %v1438_v47 = vmov (%p199_p6), %v416_v40  }
 0x10a   : > { %1101 = vmatmul.mubr.msk.f32.vlgmr.msra.gmra.mxu0 %vm208_vm2, %v1428_v4  ;;  %1103 = vmatprep.subr.mxu0 (%p199_p6), %v324_v34 }
 0x10b   :  { %1107 = vmatprep.mubr.msk.f32.mxu0 (%p199_p6), %vm107_vm0, %v1584_v8  ;;  %1104 = vmatpush3.msra.mxu0 (%p199_p6), %v324_v34 }
 0x10c   :  { %1105 = vmatprep.subr.mxu0 (%p199_p6), %v323_v35 }
 0x10d   :  { %1106 = vmatpush3.msra.mxu0 (%p199_p6), %v323_v35 }
 0x10e   :  { %1108 = vmatmul.mubr.msk.f32.vlgmr.msra.gmra.mxu0 (%p199_p6), %vm107_vm0, %v1588_v9 }
 0x1ca   : > { %v278_v17 = vpop.f32.mrf.mxu0 }
 0x1cb   : > { %v282_v18 = vadd.f32 %v278_v17, %v207_v16 }
 0x1cc   : > { %v1102_v19 = vpop.f32.mrf.mxu0 }
 0x1cd   : > { %1252 = vtanh.f32 %v282_v18  ;;  %v1028_v21 = vmul.f32 -1.442695, %v282_v18 }
 0x1ce   :  { %v1109_v43 = vpop.f32.mrf.mxu0 (%p199_p6) }
 0x1cf   : > { %1254 = vpow2.f32 %v1028_v21  ;;  %v405_v44 = vadd.f32 (%p199_p6), %v1109_v43, %v1030_v42 }
 0x1d0   :  { %v399_v45 = vpop.f32.mrf.mxu0 (%p199_p6) }
 0x1d1   :  { %409 = vst [vmem:[#allocation2 + $0x8] sm:$0xff] (%p199_p6), %v405_v44  ;;  %v400_v46 = vadd.f32 (%p199_p6), %v1030_v42, %v399_v45 }
 0x1d3   :  { %408 = vst [vmem:[#allocation2] sm:$0xff] (%p199_p6), %v400_v46 }
 0x1da   : > { %v1253_v20 = vpop.eup %1252 }
 0x1db   : > { %296 = vrot.lane.b32.xlu0 %v1253_v20, %s1476_s1 }
 0x1dc   : > { %v1255_v22 = vpop.eup %1254 }
 0x1dd   : > { %v286_v23 = vadd.f32 1.0, %v1255_v22 }
 0x1df   : > { %291 = vrot.lane.b32.xlu0 %v1424_v5, %s1477_s18  ;;  %1256 = vrcp.f32 %v286_v23 }
 0x1ec   : > { %v1257_v24 = vpop.eup %1256 }
 0x24d   : > { %v297_v25 = vpop.permute.xlu0 %296 }
 0x24e   : > { %v299_v26 = vmul.f32 %v1257_v24, %v297_v25 }
 0x250   : > { %301 = vrot.lane.b32.xlu1 %v299_v26, %s1477_s18 }
 0x251   : > { %v292_v27 = vpop.permute.xlu0 %291 }
 0x252   : > { %v294_v28 = vmul.f32 %v1257_v24, %v292_v27 }
 0x2c2   : > { %v302_v29 = vpop.permute.xlu1 %301 }
 0x2c3   : > { %v304_v30 = vadd.f32 %v302_v29, %v294_v28 }
 0x2c5   : > { %1258 = vtanh.f32 %v304_v30 }
 0x2d2   : > { %v1259_v31 = vpop.eup %1258 }
 0x2d3   : > { %307 = vrot.lane.b32.xlu1 %v1259_v31, %s1476_s1 }
 0x2d7   : > { %319 = vrot.lane.b32.xlu1 %v304_v30, %s1478_s19 }
 0x345   : > { %v308_v32 = vpop.permute.xlu1 %307 }
 0x346   : > { %v310_v33 = vmul.f32 %v1257_v24, %v308_v32 }
 0x348   : > { %312 = vrot.lane.b32.xlu0 %v310_v33, %s1477_s18 }
 0x349   : > { %v320_v5 = vpop.permute.xlu1 %319  }
 0x3b7   :  { %201 = sbr.rel (!%p199_p6) target bundleno = 257 (0x101), region = 129 }
 0x3ba   : > { %v313_v4 = vpop.permute.xlu0 %312  }
 0x3bb   : > { %317 = vst.msk [vmem:[%s315_s20] sm:$0x3] %vm316_vm3, %v313_v4 }
 0x3bc LB: > { %v1479_v48 = vmov 0.0   ;;  %vm1480_vm4 = vmmov 0   ;;  %s427_s2 = ssub.s32 7, %s1444_s29  ;;  %s1481_s30 = smov 64   ;;  %s1444_s29 = sphi %s1653_s29, %s424_s29   ;;  %v1440_v47 = vphi %v1438_v47, %v536_v47   ;;  %v1436_v41 = vphi %v418_v41, %v543_v41  }
 0x3bd   : > { %1110 = vmatprep.subr.mxu0 %v1479_v48  ;;  %1118 = vmatprep.mubr.msk.f32.mxu0 %vm1480_vm4, %v1479_v48  ;;  %s1665_s3 = sshll.u32 %s427_s2, 1  ;;  %s1482_s13 = smov 32  }
 0x3be   : > { %1111 = vmatpush3.msra.mxu0 %v1646_v39  ;;  %s429_s5 = scalar_lea.vmem [#allocation2], %s1665_s3  ;;  %s1483_s14 = smov 96  }
 0x3bf   : > { %1112 = vmatprep.subr.mxu0 %v1479_v48  ;;  %v430_v49 = vld [vmem:[%s429_s5] sm:$0x3]  ;;  %s538_s15 = scalar_lea.vmem [#allocation4], %s1665_s3  ;;  %s424_s29 = sadd.s32 1, %s1444_s29  }
 0x3c0   : > { %1113 = vmatpush3.msra.mxu0 %v1641_v38  ;;  %p421_p7 = scmp.ge.s32.totalorder %s424_s29, 8  }
 0x3c1   : > { %1114 = vmatprep.subr.mxu0 %v1479_v48  ;;  %v1043_v3 = vld [vmem:[%s1785_s6 + $0x38] sm:$0xff] (%p421_p7)  ;;  %v1042_v5 = vld [vmem:[%s1785_s6 + $0x30] sm:$0xff] (%p421_p7)  ;;  %v1041_v7 = vld [vmem:[%s1785_s6 + $0x28] sm:$0xff] (%p421_p7)  ;;  %v734_v15 = vlaneseq (%p421_p7)  ;;  %vm730_vm5 = vcmask (%p421_p7), 39936   ;;  %s1728_s17 = smov (%p421_p7), 1  }
 0x3c2   : > { %1115 = vmatpush3.msra.mxu0 %v1636_v37  ;;  %v550_v4 = vld [vmem:[%s1785_s6 + $0x18] sm:$0xff] (%p421_p7)  ;;  %v549_v6 = vld [vmem:[%s1785_s6 + $0x10] sm:$0xff] (%p421_p7)  ;;  %v548_v8 = vld [vmem:[%s1785_s6 + $0x8] sm:$0xff] (%p421_p7) }
 0x3c3   : > { %1116 = vmatprep.subr.mxu0 %v1479_v48  ;;  %1132 = vmatprep.subr.mxu1 (%p421_p7), %v550_v4  ;;  %v1040_v9 = vld [vmem:[%s1785_s6 + $0x20] sm:$0xff] (%p421_p7)  ;;  %v545_v12 = vld [vmem:[#allocation3] sm:$0xff] (%p421_p7)  ;;  %v546_v14 = vld [vmem:[#allocation3 + $0x8] sm:$0xff] (%p421_p7)  ;;  %v1709_v17 = vand.u32 (%p421_p7), 127, %v734_v15 }
 0x3c4   : > { %1117 = vmatpush3.msra.mxu0 %v1631_v36  ;;  %1133 = vmatpush3.msra.mxu1 (%p421_p7), %v550_v4  ;;  %v547_v10 = vld [vmem:[%s1785_s6] sm:$0xff] (%p421_p7) }
 0x3c5   : > { %1119 = vmatmul.mubr.msk.f32.vlgmr.msra.gmra.mxu0 %vm208_vm2, %v1440_v47  ;;  %1121 = vmatprep.subr.mxu0 (%p421_p7), %v1043_v3  ;;  %v1706_v16 = vld [vmem:[%s1789_s10] sm:$0x1f] (%p421_p7) }
 0x3c6   :  { %1122 = vmatpush3.msra.mxu0 (%p421_p7), %v1043_v3  ;;  %1134 = vmatprep.subr.mxu1 (%p421_p7), %v549_v6  ;;  %v1048_v20 = vld [vmem:[%s1786_s7] ss:$0 sm:$0xff] (%p421_p7) }
 0x3c7   :  { %1123 = vmatprep.subr.mxu0 (%p421_p7), %v1042_v5  ;;  %1135 = vmatpush3.msra.mxu1 (%p421_p7), %v549_v6  ;;  %v1049_v27 = vld [vmem:[%s1787_s8] ss:$0 sm:$0xff] (%p421_p7) }
 0x3c8   :  { %1124 = vmatpush3.msra.mxu0 (%p421_p7), %v1042_v5  ;;  %1136 = vmatprep.subr.mxu1 (%p421_p7), %v548_v8 }
 0x3c9   :  { %1125 = vmatprep.subr.mxu0 (%p421_p7), %v1041_v7  ;;  %1137 = vmatpush3.msra.mxu1 (%p421_p7), %v548_v8 }
 0x3ca   :  { %1126 = vmatpush3.msra.mxu0 (%p421_p7), %v1041_v7  ;;  %1138 = vmatprep.subr.mxu1 (%p421_p7), %v547_v10 }
 0x3cb   :  { %1127 = vmatprep.subr.mxu0 (%p421_p7), %v1040_v9  ;;  %1139 = vmatpush3.msra.mxu1 (%p421_p7), %v547_v10 }
 0x3cc   :  { %1128 = vmatpush3.msra.mxu0 (%p421_p7), %v1040_v9  ;;  %1140 = vmatprep.mubr.msk.f32.mxu1 (%p421_p7), %vm208_vm2, %v545_v12 }
 0x3cd   :  { %1141 = vmatmul.mubr.msk.f32.vlgmr.msra.gmra.mxu1 (%p421_p7), %vm208_vm2, %v546_v14 }
 0x485   : > { %v501_v50 = vpop.f32.mrf.mxu0 }
 0x486   : > { %v505_v51 = vadd.f32 %v501_v50, %v430_v49 }
 0x487   : > { %v1120_v52 = vpop.f32.mrf.mxu0 }
 0x488   : > { %1260 = vtanh.f32 %v505_v51  ;;  %v1039_v54 = vmul.f32 -1.442695, %v505_v51 }
 0x48a   : > { %1262 = vpow2.f32 %v1039_v54 }
 0x48d   :  { %v1142_v19 = vpop.f32.mrf.mxu1 (%p421_p7) }
 0x48f   :  { %v712_v23 = vpop.f32.mrf.mxu1 (%p421_p7) }
 0x495   : > { %v1261_v53 = vpop.eup %1260 }
 0x496   : > { %519 = vrot.lane.b32.xlu0 %v1261_v53, %s1481_s30 }
 0x497   : > { %v1263_v55 = vpop.eup %1262 }
 0x498   : > { %v509_v56 = vadd.f32 1.0, %v1263_v55 }
 0x49a   : > { %514 = vrot.lane.b32.xlu0 %v1436_v41, %s1482_s13  ;;  %1264 = vrcp.f32 %v509_v56 }
 0x4a7   : > { %v1265_v57 = vpop.eup %1264 }
 0x508   : > { %v520_v58 = vpop.permute.xlu0 %519 }
 0x509   : > { %v522_v59 = vmul.f32 %v1265_v57, %v520_v58 }
 0x50b   : > { %524 = vrot.lane.b32.xlu1 %v522_v59, %s1482_s13 }
 0x50c   : > { %v515_v60 = vpop.permute.xlu0 %514 }
 0x50d   : > { %v517_v61 = vmul.f32 %v1265_v57, %v515_v60 }
 0x57d   : > { %v525_v62 = vpop.permute.xlu1 %524 }
 0x57e   : > { %v527_v63 = vadd.f32 %v525_v62, %v517_v61 }
 0x580   : > { %1266 = vtanh.f32 %v527_v63 }
 0x58d   : > { %v1267_v0 = vpop.eup %1266 }
 0x58e   : > { %530 = vrot.lane.b32.xlu1 %v1267_v0, %s1481_s30 }
 0x592   : > { %542 = vrot.lane.b32.xlu1 %v527_v63, %s1483_s14 }
 0x600   : > { %v531_v1 = vpop.permute.xlu1 %530 }
 0x601   : > { %v533_v2 = vmul.f32 %v1265_v57, %v531_v1 }
 0x603   : > { %535 = vrot.lane.b32.xlu0 %v533_v2, %s1482_s13 }
 0x604   : > { %v543_v41 = vpop.permute.xlu1 %542  }
 0x672   :  { %423 = sbr.rel (!%p421_p7) target bundleno = 956 (0x3bc), region = 140 }
 0x675   : > { %v536_v47 = vpop.permute.xlu0 %535  }
 0x676   : > { %540 = vst.msk [vmem:[%s538_s15] sm:$0x3] %vm316_vm3, %v536_v47 }
 0x67d   :  { %v551_v11 = vld [vmem:[#allocation4] sm:$0xff]  ;;  %v552_v13 = vld [vmem:[#allocation4 + $0x8] sm:$0xff] }
 0x67e   :  { %1129 = vmatprep.mubr.msk.f32.mxu0 %vm208_vm2, %v551_v11 }
 0x67f   :  { %1130 = vmatmul.mubr.msk.f32.vlgmr.msra.gmra.mxu0 %vm208_vm2, %v552_v13 }
 0x73f   :  { %v1131_v18 = vpop.f32.mrf.mxu0 }
 0x740   :  { %v718_v21 = vadd.f32 %v1142_v19, %v1131_v18 }
 0x741   :  { %v631_v22 = vpop.f32.mrf.mxu0 }
 0x742   :  { %v729_v24 = vadd.f32 %v1048_v20, %v718_v21  ;;  %v713_v25 = vadd.f32 %v712_v23, %v631_v22 }
 0x744   :  { %732 = vst.msk [vmem:[%s1790_s11 + $0x8] sm:$0xff] %vm730_vm5, %v729_v24  ;;  %v728_v26 = vadd.f32 %v1048_v20, %v713_v25 }
 0x746   :  { %731 = vst.msk [vmem:[%s1790_s11] sm:$0xff] %vm730_vm5, %v728_v26 }
 0x74d   :  { %v736_v28 = vld [vmem:[%s1790_s11] sm:$0x3] }
 0x74e   :  { %v744_v29 = vadd.f32 %v1049_v27, %v736_v28  }
 0x74f LB: > { %v1484_v30 = vmov 1966171168   ;;  %v1735_v32 = vshrl.u32 %v734_v15, 7  ;;  %vm790_vm6 = vcmask 36864   ;;  %s1050_s8 = sshll.u32 %s1452_s17, 1  ;;  %v1485_v60 = vmov 0   ;;  %s1452_s17 = sphi %s1728_s17, %s750_s17   ;;  %v1448_v29 = vphi %v744_v29, %v1792_v29  }
 0x750   : > { %v757_v31 = vunpack.c.l.s4 %v1484_v30  ;;  %s753_s19 = scalar_lea.vmem %s1790_s11, %s1050_s8  ;;  %1269 = vset.pattern.permute.xlu1 %v1485_v60  ;;  %1268 = vset.pattern.permute.xlu0 %v1485_v60  ;;  %s1051_s20 = sadd.s32 4294967295, %s1452_s17  ;;  %vm840_vm11 = vcmask 1041409   ;;  %vm844_vm12 = vcmask 33792  }
 0x751   : > { %v780_v36 = vsub.s32 0, %v1735_v32  ;;  %v754_v46 = vld [vmem:[%s753_s19] sm:$0x3]  ;;  %v856_v58 = vsub.s32 1, %v1735_v32  ;;  %v834_v19 = vsub.s32 %v1709_v17, %v1735_v32  ;;  %s1052_s21 = sshll.u32 %s1051_s20, 1  ;;  %s750_s17 = sadd.s32 1, %s1452_s17  }
 0x752   : > { %v758_v33 = vunpack.c.0.s8 %v757_v31  ;;  %s843_s22 = scalar_lea.vmem [#allocation5], %s1052_s21  ;;  %p747_p8 = scmp.ge.s32.totalorder %s750_s17, 8  }
 0x753   : > { %v850_v47 = vrot.slane %v754_v46, %v780_v36  ;;  %v857_v59 = vrot.slane %v754_v46, %v856_v58  ;;  %v1053_v31 = vld [vmem:[%s1788_s9] ss:$0 sm:$0xff] (%p747_p8)  ;;  %vm912_vm15 = vcmp.eq.s32.totalorder (%p747_p8), %v1709_v17, 7  ;;  %s1768_s9 = smov (%p747_p8), 0  }
 0x754   : > { %v761_v34 = vsub.s32 %v758_v33, %v1735_v32 }
 0x756   : > { %v762_v35 = vrot.slane %v1448_v29, %v761_v34 }
 0x758   : > { %v770_v37 = vrot.slane %v762_v35, %v761_v34  ;;  %v763_v38 = vcombine.high %v762_v35, %v762_v35 }
 0x75a   : > { %v781_v39 = vrot.slane %v770_v37, %v780_v36  ;;  %v777_v40 = vrot.slane %v763_v38, %v761_v34 }
 0x75c   : > { %v788_v41 = vadd.f32 %v781_v39, %v1706_v16  ;;  %v785_v42 = vrot.slane %v777_v40, %v780_v36 }
 0x75e   : > { %v791_v43 = vsel %vm790_vm6, %v788_v41, -inf  ;;  %v789_v44 = vadd.f32 %v785_v42, %v1706_v16 }
 0x75f   : > { %792 = vmax.xlane.f32.xlu0 %v791_v43 }
 0x760   : > { %v794_v45 = vsel %vm790_vm6, %v789_v44, -inf }
 0x763   : > { %795 = vmax.xlane.f32.xlu0 %v794_v45 }
 0x779   : > { %852 = vbcast.lane.b32.xlu0 %v850_v47, 256 }
 0x7e8   : > { %v793_v48 = vpop.xlane.xlu0 %792 }
 0x7e9   : > { %vm797_vm7 = vcmp.eq.f32.partialorder %v788_v41, %v793_v48 }
 0x7ea   : > { %v799_v49 = vsel %vm797_vm7, %v1709_v17, 5 }
 0x7eb   : > { %v801_v50 = vsel %vm790_vm6, %v799_v49, 2147483647 }
 0x7ec   : > { %v796_v51 = vpop.xlane.xlu0 %795  ;;  %v803_v52 = vshra.s32 %v801_v50, 16  ;;  %v802_v61 = vand.u32 65535, %v801_v50 }
 0x7ed   : > { %vm798_vm8 = vcmp.eq.f32.partialorder %v789_v44, %v796_v51 }
 0x7ee   : > { %v800_v53 = vsel %vm798_vm8, %v1709_v17, 5  ;;  %v805_v54 = vcvt.s32.f32 %v803_v52  ;;  %v804_v63 = vcvt.s32.f32 %v802_v61 }
 0x7ef   : > { %v816_v55 = vsel %vm790_vm6, %v800_v53, 2147483647 }
 0x7f0   : > { %806 = vmin.xlane.f32.xlu1 %v805_v54  ;;  %v818_v56 = vshra.s32 %v816_v55, 16  ;;  %v817_v0 = vand.u32 65535, %v816_v55  ;;  %v853_v7 = vpop.permute.xlu0 %852 }
 0x7f1   : > { %v863_v8 = vadd.f32 %v853_v7, %v793_v48 }
 0x7f2   : > { %v820_v57 = vcvt.s32.f32 %v818_v56  ;;  %v819_v3 = vcvt.s32.f32 %v817_v0 }
 0x7f4   : > { %821 = vmin.xlane.f32.xlu1 %v820_v57 }
 0x805   : > { %859 = vbcast.lane.b32.xlu1 %v857_v59, 256 }
 0x879   : > { %v807_v62 = vpop.xlane.xlu1 %806 }
 0x87a   : > { %vm808_vm9 = vcmp.eq.f32.partialorder %v805_v54, %v807_v62  ;;  %v813_v9 = vcvt.f32.s32 %v807_v62 }
 0x87b   : > { %v809_v1 = vsel %vm808_vm9, %v804_v63, inf }
 0x87c   : > { %810 = vmin.xlane.f32.xlu1 %v809_v1  ;;  %v814_v13 = vshll.u32 %v813_v9, 16 }
 0x87d   : > { %v822_v2 = vpop.xlane.xlu1 %821 }
 0x87e   : > { %vm823_vm10 = vcmp.eq.f32.partialorder %v820_v57, %v822_v2  ;;  %v828_v11 = vcvt.f32.s32 %v822_v2 }
 0x87f   : > { %v824_v4 = vsel %vm823_vm10, %v819_v3, inf }
 0x880   : > { %825 = vmin.xlane.f32.xlu0 %v824_v4  ;;  %v829_v18 = vshll.u32 %v828_v11, 16 }
 0x881   : > { %v860_v5 = vpop.permute.xlu1 %859 }
 0x882   : > { %v864_v6 = vadd.f32 %v860_v5, %v796_v51 }
 0x88d   : > { %871 = vperm.xlu1 %1269, %v864_v6  }
 0x896   : > { %868 = vperm.xlu0 %1268, %v863_v8  }
 0x905   : > { %v811_v10 = vpop.xlane.xlu1 %810 }
 0x906   : > { %v812_v12 = vcvt.f32.s32 %v811_v10 }
 0x908   : > { %v815_v20 = vadd.s32 %v814_v13, %v812_v12 }
 0x909   : > { %v826_v14 = vpop.xlane.xlu0 %825  ;;  %v872_v25 = vpop.permute.xlu1 %871 }
 0x90a   : > { %v827_v21 = vcvt.f32.s32 %v826_v14  ;;  %v835_v23 = vrot.slane %v815_v20, %v834_v19  ;;  %v880_v28 = vrot.slane %v872_v25, %v834_v19 }
 0x90c   : > { %v830_v22 = vadd.s32 %v829_v18, %v827_v21 }
 0x90e   : > { %v839_v24 = vrot.slane %v830_v22, %v834_v19 }
 0x910   : > { %v841_v26 = vsel %vm840_vm11, %v839_v24, %v835_v23 }
 0x911   : > { %845 = vst.msk [vmem:[%s843_s22] sm:$0x3] %vm844_vm12, %v841_v26  ;;  %v869_v27 = vpop.permute.xlu0 %868  ;;  %749 = sbr.rel (!%p747_p8) target bundleno = 1871 (0x74f), region = 151 }
 0x912   : > { %v876_v29 = vrot.slane %v869_v27, %v834_v19 }
 0x914   : > { %v881_v30 = vsel %vm840_vm11, %v880_v28, %v876_v29  }
 0x915   : > { %v1792_v29 = vmov %v881_v30  ;;  %v890_v32 = vadd.f32 (%p747_p8), %v1053_v31, %v881_v30 }
 0x917   :  { %v892_v33 = vsel %vm844_vm12, %v890_v32, -inf }
 0x918   :  { %893 = vmax.xlane.f32.xlu0 %v892_v33 }
 0x9a1   :  { %v894_v34 = vpop.xlane.xlu0 %893 }
 0x9a2   :  { %vm895_vm13 = vcmp.eq.f32.partialorder %v890_v32, %v894_v34 }
 0x9a3   :  { %v896_v35 = vsel %vm895_vm13, %v1709_v17, 5 }
 0x9a4   :  { %v897_v36 = vsel %vm844_vm12, %v896_v35, 2147483647 }
 0x9a5   :  { %v899_v37 = vshra.s32 %v897_v36, 16  ;;  %v898_v39 = vand.u32 65535, %v897_v36 }
 0x9a7   :  { %v901_v38 = vcvt.s32.f32 %v899_v37  ;;  %v900_v41 = vcvt.s32.f32 %v898_v39 }
 0x9a9   :  { %902 = vmin.xlane.f32.xlu0 %v901_v38 }
 0xa32   :  { %v903_v40 = vpop.xlane.xlu0 %902 }
 0xa33   :  { %vm904_vm14 = vcmp.eq.f32.partialorder %v901_v38, %v903_v40  ;;  %v909_v16 = vcvt.f32.s32 %v903_v40 }
 0xa34   :  { %v905_v15 = vsel %vm904_vm14, %v900_v41, inf }
 0xa35   :  { %906 = vmin.xlane.f32.xlu1 %v905_v15  ;;  %v910_v43 = vshll.u32 %v909_v16, 16 }
 0xabe   :  { %v907_v42 = vpop.xlane.xlu1 %906 }
 0xabf   :  { %v908_v44 = vcvt.f32.s32 %v907_v42 }
 0xac1   :  { %v911_v45 = vadd.s32 %v910_v43, %v908_v44  }
 0xac3   :  { %v913_v46 = vsel %vm912_vm15, %v911_v45, 0   ;;  %v1458_v48 = vmov %v911_v45  }
 0xac4   :  { %v1454_v47 = vmov %v913_v46  }
 0xac5 LB: > { %s922_s11 = ssub.s32 6, %s1464_s9  ;;  %vm926_vm0 = vcmp.eq.s32.totalorder %v1709_v17, %v1460_v48  ;;  %s919_s9 = sadd.s32 1, %s1464_s9   ;;  %s1464_s9 = sphi %s1768_s9, %s919_s9   ;;  %v1460_v48 = vphi %v1458_v48, %v940_v48   ;;  %v1456_v47 = vphi %v1454_v47, %v1455_v47  }
 0xac6   : > { %s1054_s24 = sshll.u32 %s922_s11, 1  ;;  %v941_v58 = vstv %s922_s11  ;;  %p916_p9 = scmp.ge.s32.totalorder %s919_s9, 7  }
 0xac7   : > { %s924_s4 = scalar_lea.vmem [#allocation5], %s1054_s24  ;;  %vm942_vm1 = vcmp.eq.s32.totalorder %v1709_v17, %v941_v58  ;;  %vm945_vm2 = vcmask (%p916_p9), 58368   ;;  %s1486_s25 = smov (%p916_p9), [#allocation14]  }
 0xac8   : > { %v925_v49 = vld [vmem:[%s924_s4] sm:$0x3]  ;;  %s955_s26 = sshll.u32 (%p916_p9), %s1486_s25, 4  ;;  %s956_s26 = int_to_ptr.vmem [resolvable:$true] %s955_s26 }
 0xac9   : > { %v927_v50 = vsel %vm926_vm0, %v925_v49, 0  ;;  %s1350_s27 = scalar_lea.vmem (%p916_p9), %s956_s26, 32  ;;  %p1355_p11 = scmp.lt.s32.totalorder (%p916_p9), %s956_s26, %s956_s26 }
 0xaca   : > { %v928_v51 = vsel %vm844_vm12, %v927_v50, 0  ;;  %p1351_p10 = scmp.ne.s32.totalorder (%p916_p9), %s956_s26, %s1350_s27  ;;  %p1356_p12 = scmp.lt.s32.totalorder (%p916_p9), %s1350_s27, %s1350_s27 }
 0xacb   : > { %v930_v52 = vshrl.u32 %v928_v51, 16  ;;  %v929_v53 = vand.u32 65535, %v928_v51 }
 0xacc   :  { %p1357_p13 = por (%p916_p9), %p1356_p12, %p1355_p11 }
 0xacd   : > { %v932_v54 = vcvt.s32.f32 %v930_v52  ;;  %v931_v55 = vcvt.s32.f32 %v929_v53 }
 0xace   :  { %p1358_p0 = pnand (%p916_p9), %p1357_p13, %p1351_p10 }
 0xacf   : > { %935 = vadd.xlane.f32.xlu0 %v932_v54 }
 0xad3   : > { %933 = vadd.xlane.f32.xlu0 %v931_v55 }
 0xb58   : > { %v936_v56 = vpop.xlane.xlu0 %935 }
 0xb59   : > { %v938_v57 = vcvt.f32.s32 %v936_v56 }
 0xb5b   : > { %v939_v60 = vshll.u32 %v938_v57, 16 }
 0xb5c   : > { %v934_v59 = vpop.xlane.xlu0 %933 }
 0xb5d   : > { %v937_v61 = vcvt.f32.s32 %v934_v59 }
 0xb5f   : > { %v940_v48 = vadd.s32 %v939_v60, %v937_v61  }
 0xb60   :  { %918 = sbr.rel (!%p916_p9) target bundleno = 2757 (0xac5), region = 162 }
 0xb61   : > { %v943_v62 = vsel %vm942_vm1, %v940_v48, 0 }
 0xb62   : > { %v944_v63 = vadd.s32 %v1456_v47, %v943_v62  }
 0xb64   : > { %v1455_v47 = vmov %v944_v63   ;;  %946 = vst.msk [vmem:[#allocation14] sm:$0x3] (%p916_p9), %vm945_vm2, %v944_v63 }
 0xb65   :  { %1361 = shalt.err (!%p1358_p0)
}
 0xb66   :  { %958 = dma.vmem_to_hbm [thread:$0]  %s956_s26, 32, %s1791_s12, [#allocation8]  }
 0xb67   :  { %1420 = dma.done.wait [#allocation8], 32  }
 0xb68   :  { %1421 = vsyncadd [#allocation8], 4294967264 }
 0xb69   :  { %964 = vsyncpa [#allocation7], 1 }
 0xb6a   :  { %965 = vsyncpa [#allocation10], 1 }
 0xb6b   :  { %966 = vsyncpa [#allocation13], 1 }
 0xb6c   :  { %967 = vsyncpa [#allocation8], 1 }

</bundles_post_ra>
